<compile_context>
chip_gen: v7x
topology: tpu7x:2x2x1
jax: 0.10.0
libtpu: 0.0.40
codegen_flags: <defaults>
</compile_context>

<pallas_src>
import jax
import jax.numpy as jnp
from jax.experimental import pallas as pl
from jax.experimental.pallas import tpu as pltpu


def _sigmoid(z):
    # EUP-friendly, exact reformulation: sigmoid(z) == 0.5*tanh(0.5*z) + 0.5.
    return 0.5 * jnp.tanh(0.5 * z) + 0.5


def mlp_kernel(x_ref, w1_ref, b1_ref, w2_ref, b2_ref, w3_ref, b3_ref, o_ref):
    xt = x_ref[...]                                                  # (8, TILE)
    # Batch on lanes; contraction over the tiny feature dim -> MXU (vex slot).
    h1 = _sigmoid(jnp.dot(w1_ref[...], xt,
                          preferred_element_type=jnp.float32) + b1_ref[...])   # (6, TILE)
    h2 = _sigmoid(jnp.dot(w2_ref[...], h1,
                          preferred_element_type=jnp.float32) + b2_ref[...])   # (4, TILE)
    h3 = _sigmoid(jnp.dot(w3_ref[...], h2,
                          preferred_element_type=jnp.float32) + b3_ref[...])   # (1, TILE)
    o_ref[...] = h3.astype(o_ref.dtype)                              # lane-dense store


def _round_up(a, b):
    return ((a + b - 1) // b) * b


def mlp_forward_t(xt, params, *, tile_n=65536):
    """xt: (8, N) float32 (features on sublanes, batch on lanes) -> (N, 1)."""
    f, n = xt.shape
    assert f == 8, "model expects 8 input features"
    w1, b1 = params["w1"], params["b1"]
    w2, b2 = params["w2"], params["b2"]
    w3, b3 = params["w3"], params["b3"]

    # Lane-pad only when N is not a multiple of 128 (no pad on the common case).
    n_lanes = _round_up(n, 128)
    if n_lanes != n:
        xt = jnp.pad(xt, ((0, 0), (0, n_lanes - n)))

    # Tile selection:
    #  * cap 131072 -> <=16 MiB of double-buffered VMEM (x block 32B/row +
    #    sublane-padded out block 32B/row, x2 buffers) -- safe on v7x's 64 MiB.
    #  * aim for >=4 grid steps so v7x's 2 TensorCores both get work.
    tile = _round_up(max(min(tile_n, 131072), 128), 128)
    tile = min(tile, max(128, _round_up(pl.cdiv(n_lanes, 4), 128)))
    grid = (pl.cdiv(n_lanes, tile),)

    const = lambda i: (0, 0)       # params: same block every step -> VMEM-resident

    out = pl.pallas_call(
        mlp_kernel,
        out_shape=jax.ShapeDtypeStruct((1, n_lanes), jnp.float32),
        grid_spec=pl.GridSpec(
            grid=grid,
            in_specs=[
                pl.BlockSpec((8, tile), lambda i: (0, i)),           # streamed x^T tile
                pl.BlockSpec(w1.shape, const), pl.BlockSpec(b1.shape, const),
                pl.BlockSpec(w2.shape, const), pl.BlockSpec(b2.shape, const),
                pl.BlockSpec(w3.shape, const), pl.BlockSpec(b3.shape, const),
            ],
            out_specs=pl.BlockSpec((1, tile), lambda i: (0, i)),
        ),
        compiler_params=pltpu.CompilerParams(
            dimension_semantics=("parallel",),   # shard batch tiles across v7x's 2 TCs
            vmem_limit_bytes=32 * 1024 * 1024,   # >= 128*tile budget on every gen
        ),
        cost_estimate=pl.CostEstimate(
            flops=163 * n_lanes,                 # ~2*(8*6+6*4+4*1)+11 per row
            transcendentals=11 * n_lanes,        # 6+4+1 tanh per row
            bytes_accessed=36 * n_lanes,         # 32 B in + 4 B out per row (kernel only)
        ),
    )(xt, w1, b1, w2, b2, w3, b3)

    return out[0, :n, None]                                          # (N, 1)


def mlp_forward(x, params, *, tile_n=65536):
    """x: (N, 8) float32 (torch layout) -> (N, 1) float32.

    Does a single x.T pass to put the batch on the lane axis; callers that can
    produce x already as (8, N) should use mlp_forward_t to skip that pass.
    """
    n, f = x.shape
    assert f == 8, "model expects 8 input features"
    return mlp_forward_t(x.T, params, tile_n=tile_n)


def init_params(key):
    """Deterministic init mimicking torch.nn.Linear (uniform +/- 1/sqrt(fan_in)).

    Weights in torch layout (out, in); biases as (out, 1) columns so they
    broadcast across the lane (batch) axis inside the kernel.
    """
    dims = [(8, 6), (6, 4), (4, 1)]
    params = {}
    for i, (fan_in, fan_out) in enumerate(dims, start=1):
        key, kw, kb = jax.random.split(key, 3)
        bound = 1.0 / jnp.sqrt(float(fan_in))
        params[f"w{i}"] = jax.random.uniform(
            kw, (fan_out, fan_in), jnp.float32, -bound, bound)
        params[f"b{i}"] = jax.random.uniform(
            kb, (fan_out, 1), jnp.float32, -bound, bound)
    return params


def reference_forward(x, params):
    sig = lambda z: 1.0 / (1.0 + jnp.exp(-z))     # exact torch-style sigmoid
    h = sig(x @ params["w1"].T + params["b1"].T)
    h = sig(h @ params["w2"].T + params["b2"].T)
    return sig(h @ params["w3"].T + params["b3"].T)


if __name__ == "__main__":
    key = jax.random.PRNGKey(0)
    params = init_params(key)
    key, k1, k2 = jax.random.split(key, 3)

    # Small shape matching the module (batch=8, 8 features) plus a batch that
    # exercises lane padding and a partial boundary block (batch=600).
    for kx, batch in ((k1, 8), (k2, 600)):
        x = jax.random.normal(kx, (batch, 8), jnp.float32)
        out = jax.block_until_ready(mlp_forward(x, params))
        ref = reference_forward(x, params)
        assert out.shape == (batch, 1)
        assert jnp.allclose(out, ref, atol=1e-5, rtol=1e-4), (
            float(jnp.max(jnp.abs(out - ref))))

    print("KERNEL_OK")
</pallas_src>

<mosaic_0001>
module attributes {stable_mosaic.version = 11 : i64} {
  func.func @mlp_kernel(%arg0: i32, %arg1: memref<8x128xf32, #tpu.memory_space<vmem>>, %arg2: memref<6x8xf32, #tpu.memory_space<vmem>>, %arg3: memref<6x1xf32, #tpu.memory_space<vmem>>, %arg4: memref<4x6xf32, #tpu.memory_space<vmem>>, %arg5: memref<4x1xf32, #tpu.memory_space<vmem>>, %arg6: memref<1x4xf32, #tpu.memory_space<vmem>>, %arg7: memref<1x1xf32, #tpu.memory_space<vmem>>, %arg8: memref<1x128xf32, #tpu.memory_space<vmem>>) attributes {dimension_semantics = [#tpu.dimension_semantics<parallel>], iteration_bounds = array<i64: 1>, scalar_prefetch = 0 : i64, scratch_operands = 0 : i64, tpu.core_type = #tpu.core_type<tc>, window_params = [{transform_indices = @transform_0, window_bounds = array<i64: 8, 128>}, {pipeline_mode = #tpu.pipeline_mode<synchronous>, transform_indices = @transform_1, window_bounds = array<i64: 6, 8>}, {pipeline_mode = #tpu.pipeline_mode<synchronous>, transform_indices = @transform_2, window_bounds = array<i64: 6, 1>}, {pipeline_mode = #tpu.pipeline_mode<synchronous>, transform_indices = @transform_3, window_bounds = array<i64: 4, 6>}, {pipeline_mode = #tpu.pipeline_mode<synchronous>, transform_indices = @transform_4, window_bounds = array<i64: 4, 1>}, {pipeline_mode = #tpu.pipeline_mode<synchronous>, transform_indices = @transform_5, window_bounds = array<i64: 1, 4>}, {pipeline_mode = #tpu.pipeline_mode<synchronous>, transform_indices = @transform_6, window_bounds = array<i64: 1, 1>}, {transform_indices = @transform_7, window_bounds = array<i64: 1, 128>}]} {
    %c0 = arith.constant 0 : index
    %c0_0 = arith.constant 0 : index
    %0 = vector.load %arg1[%c0, %c0_0] : memref<8x128xf32, #tpu.memory_space<vmem>>, vector<8x128xf32>
    %c0_1 = arith.constant 0 : index
    %c0_2 = arith.constant 0 : index
    %1 = vector.load %arg2[%c0_1, %c0_2] : memref<6x8xf32, #tpu.memory_space<vmem>>, vector<6x8xf32>
    %cst = arith.constant dense<0.000000e+00> : vector<6x128xf32>
    %2 = tpu.matmul %1, %0, %cst {dimension_numbers = #tpu.dot_dimension_numbers<[1], [0], [0], [1], [0, 0, 1, 1], [], []>} : vector<6x8xf32>, vector<8x128xf32>, vector<6x128xf32> -> vector<6x128xf32>
    %c0_3 = arith.constant 0 : index
    %c0_4 = arith.constant 0 : index
    %3 = vector.load %arg3[%c0_3, %c0_4] : memref<6x1xf32, #tpu.memory_space<vmem>>, vector<6x1xf32>
    %4 = vector.broadcast %3 : vector<6x1xf32> to vector<6x128xf32>
    %5 = arith.addf %2, %4 : vector<6x128xf32>
    %cst_5 = arith.constant 5.000000e-01 : f32
    %6 = vector.broadcast %cst_5 : f32 to vector<6x128xf32>
    %7 = arith.mulf %6, %5 : vector<6x128xf32>
    %8 = math.tanh %7 : vector<6x128xf32>
    %cst_6 = arith.constant 5.000000e-01 : f32
    %9 = vector.broadcast %cst_6 : f32 to vector<6x128xf32>
    %10 = arith.mulf %9, %8 : vector<6x128xf32>
    %cst_7 = arith.constant 5.000000e-01 : f32
    %11 = vector.broadcast %cst_7 : f32 to vector<6x128xf32>
    %12 = arith.addf %10, %11 : vector<6x128xf32>
    %c0_8 = arith.constant 0 : index
    %c0_9 = arith.constant 0 : index
    %13 = vector.load %arg4[%c0_8, %c0_9] : memref<4x6xf32, #tpu.memory_space<vmem>>, vector<4x6xf32>
    %cst_10 = arith.constant dense<0.000000e+00> : vector<4x128xf32>
    %14 = tpu.matmul %13, %12, %cst_10 {dimension_numbers = #tpu.dot_dimension_numbers<[1], [0], [0], [1], [0, 0, 1, 1], [], []>} : vector<4x6xf32>, vector<6x128xf32>, vector<4x128xf32> -> vector<4x128xf32>
    %c0_11 = arith.constant 0 : index
    %c0_12 = arith.constant 0 : index
    %15 = vector.load %arg5[%c0_11, %c0_12] : memref<4x1xf32, #tpu.memory_space<vmem>>, vector<4x1xf32>
    %16 = vector.broadcast %15 : vector<4x1xf32> to vector<4x128xf32>
    %17 = arith.addf %14, %16 : vector<4x128xf32>
    %cst_13 = arith.constant 5.000000e-01 : f32
    %18 = vector.broadcast %cst_13 : f32 to vector<4x128xf32>
    %19 = arith.mulf %18, %17 : vector<4x128xf32>
    %20 = math.tanh %19 : vector<4x128xf32>
    %cst_14 = arith.constant 5.000000e-01 : f32
    %21 = vector.broadcast %cst_14 : f32 to vector<4x128xf32>
    %22 = arith.mulf %21, %20 : vector<4x128xf32>
    %cst_15 = arith.constant 5.000000e-01 : f32
    %23 = vector.broadcast %cst_15 : f32 to vector<4x128xf32>
    %24 = arith.addf %22, %23 : vector<4x128xf32>
    %c0_16 = arith.constant 0 : index
    %c0_17 = arith.constant 0 : index
    %25 = vector.load %arg6[%c0_16, %c0_17] : memref<1x4xf32, #tpu.memory_space<vmem>>, vector<1x4xf32>
    %cst_18 = arith.constant dense<0.000000e+00> : vector<1x128xf32>
    %26 = tpu.matmul %25, %24, %cst_18 {dimension_numbers = #tpu.dot_dimension_numbers<[1], [0], [0], [1], [0, 0, 1, 1], [], []>} : vector<1x4xf32>, vector<4x128xf32>, vector<1x128xf32> -> vector<1x128xf32>
    %c0_19 = arith.constant 0 : index
    %c0_20 = arith.constant 0 : index
    %27 = vector.load %arg7[%c0_19, %c0_20] : memref<1x1xf32, #tpu.memory_space<vmem>>, vector<1x1xf32>
    %28 = vector.broadcast %27 : vector<1x1xf32> to vector<1x128xf32>
    %29 = arith.addf %26, %28 : vector<1x128xf32>
    %cst_21 = arith.constant 5.000000e-01 : f32
    %30 = vector.broadcast %cst_21 : f32 to vector<1x128xf32>
    %31 = arith.mulf %30, %29 : vector<1x128xf32>
    %32 = math.tanh %31 : vector<1x128xf32>
    %cst_22 = arith.constant 5.000000e-01 : f32
    %33 = vector.broadcast %cst_22 : f32 to vector<1x128xf32>
    %34 = arith.mulf %33, %32 : vector<1x128xf32>
    %cst_23 = arith.constant 5.000000e-01 : f32
    %35 = vector.broadcast %cst_23 : f32 to vector<1x128xf32>
    %36 = arith.addf %34, %35 : vector<1x128xf32>
    %c0_24 = arith.constant 0 : index
    %c0_25 = arith.constant 0 : index
    %37 = vector.load %arg8[%c0_24, %c0_25] : memref<1x128xf32, #tpu.memory_space<vmem>>, vector<1x128xf32>
    tpu.vector_store %arg8[%c0_24, %c0_25], %36 {strides = array<i32>} : memref<1x128xf32, #tpu.memory_space<vmem>>, vector<1x128xf32>,
    return
  }
  func.func @transform_0(%arg0: i32) -> (i32, i32) {
    %c0_i32 = arith.constant 0 : i32
    %c0_i32_0 = arith.constant 0 : i32
    return %c0_i32, %arg0 : i32, i32
  }
  func.func @transform_1(%arg0: i32) -> (i32, i32) {
    %c0_i32 = arith.constant 0 : i32
    %c0_i32_0 = arith.constant 0 : i32
    %c0_i32_1 = arith.constant 0 : i32
    return %c0_i32, %c0_i32_0 : i32, i32
  }
  func.func @transform_2(%arg0: i32) -> (i32, i32) {
    %c0_i32 = arith.constant 0 : i32
    %c0_i32_0 = arith.constant 0 : i32
    %c0_i32_1 = arith.constant 0 : i32
    return %c0_i32, %c0_i32_0 : i32, i32
  }
  func.func @transform_3(%arg0: i32) -> (i32, i32) {
    %c0_i32 = arith.constant 0 : i32
    %c0_i32_0 = arith.constant 0 : i32
    %c0_i32_1 = arith.constant 0 : i32
    return %c0_i32, %c0_i32_0 : i32, i32
  }
  func.func @transform_4(%arg0: i32) -> (i32, i32) {
    %c0_i32 = arith.constant 0 : i32
    %c0_i32_0 = arith.constant 0 : i32
    %c0_i32_1 = arith.constant 0 : i32
    return %c0_i32, %c0_i32_0 : i32, i32
  }
  func.func @transform_5(%arg0: i32) -> (i32, i32) {
    %c0_i32 = arith.constant 0 : i32
    %c0_i32_0 = arith.constant 0 : i32
    %c0_i32_1 = arith.constant 0 : i32
    return %c0_i32, %c0_i32_0 : i32, i32
  }
  func.func @transform_6(%arg0: i32) -> (i32, i32) {
    %c0_i32 = arith.constant 0 : i32
    %c0_i32_0 = arith.constant 0 : i32
    %c0_i32_1 = arith.constant 0 : i32
    return %c0_i32, %c0_i32_0 : i32, i32
  }
  func.func @transform_7(%arg0: i32) -> (i32, i32) {
    %c0_i32 = arith.constant 0 : i32
    %c0_i32_0 = arith.constant 0 : i32
    return %c0_i32, %arg0 : i32, i32
  }
}

</mosaic_0001>

<bundles_post_ra>
// kernel: tpu_custom_call.1
= control target key start
LH: loop header
LB: loop body
LE: loop exit
PB: predicated region body
PF: predicated region fallthrough
CT: control target
= control target key end

     0   :  { %s451_s0 = inlined_call_operand.vmem [shape: f32[8,128], index: 0, kind: input, shape index: {}]   ;;  %s452_s1 = inlined_call_operand.vmem [shape: f32[6,8], index: 1, kind: input, shape index: {}]   ;;  %s453_s2 = inlined_call_operand.vmem [shape: f32[6,1], index: 2, kind: input, shape index: {}]   ;;  %s454_s3 = inlined_call_operand.vmem [shape: f32[4,6], index: 3, kind: input, shape index: {}]   ;;  %s455_s4 = inlined_call_operand.vmem [shape: f32[4,1], index: 4, kind: input, shape index: {}]   ;;  %s456_s5 = inlined_call_operand.vmem [shape: f32[1,4], index: 5, kind: input, shape index: {}]   ;;  %s457_s6 = inlined_call_operand.<no memory space> [shape: f32[1,1], index: 6, kind: input, shape index: {}]   ;;  %s458_s7 = inlined_call_operand.hbm [shape: f32[1,128], index: 7, kind: output, shape index: {}]  }
   0x1   :  { %v12_v0 = vstv %s457_s6 }
   0x2   :  { %13 = vst [vmem:[#allocation2] sm:$0x1] %v12_v0 }
   0x3   :  { %v29_v1 = vld [vmem:[%s451_s0] sm:$0xff]  ;;  %vm37_vm0 = vcmask 64512   ;;  %v374_v3 = vmov 0.0   ;;  %vm375_vm1 = vmmov 0   ;;  %v376_v5 = vmov 0  }
   0x4   :  { %v30_v2 = vld [vmem:[%s452_s1] sm:$0x3f]  ;;  %323 = vmatprep.subr.mxu0 %v374_v3  ;;  %325 = vmatprep.mubr.msk.f32.mxu0 %vm375_vm1, %v374_v3 }
   0x5   :  { %v31_v4 = vld [vmem:[%s453_s2] sm:$0x3f]  ;;  %324 = vmatpush3.msra.mxu0 %v29_v1  ;;  %342 = vset.pattern.permute.xlu0 %v376_v5 }
   0x6   :  { %14 = vsyncpa [#allocation4], 0  ;;  %326 = vmatmul.mubr.msk.f32.vlgmr.msra.gmra.mrb[0].mxu0 %vm37_vm0, %v30_v2  ;;  %34 = vperm.xlu0 %342, %v31_v4   ;;  %v116_v6 = vld [vmem:[%s455_s4] sm:$0xf]  ;;  %vm126_vm2 = vcmask 1045504   ;;  %vm122_vm3 = vcmask 48128   ;;  %v211_v26 = vlaneseq }
   0x7   :  { %328 = vmatprep.subr.mxu1 %v374_v3  ;;  %330 = vmatprep.mubr.msk.f32.mxu1 %vm375_vm1, %v374_v3  ;;  %v115_v15 = vld [vmem:[%s454_s3] sm:$0xf]  ;;  %vm219_vm4 = vcmask 1043456   ;;  %vm215_vm5 = vcmask 31744   ;;  %s377_s3 = smov [#allocation3]  }
   0x8   :  { %333 = vmatprep.subr.mxu0 %v374_v3  ;;  %335 = vmatprep.mubr.msk.f32.mxu0 %vm375_vm1, %v374_v3  ;;  %v204_v25 = vld [vmem:[%s456_s5] sm:$0x1]  ;;  %v212_v27 = vshrl.u32 %v211_v26, 7  ;;  %s304_s10 = sshll.u32 %s377_s3, 4  ;;  %s305_s10 = int_to_ptr.vmem [resolvable:$true] %s304_s10 }
   0x9   :  { %343 = vset.pattern.permute.xlu1 %v376_v5  ;;  %v205_v16 = vld [vmem:[#allocation2] sm:$0x1]  ;;  %s350_s5 = scalar_lea.vmem %s305_s10, 16  ;;  %s354_s11 = scalar_lea.vmem %s305_s10, 32 }
   0xa   :  { %119 = vperm.xlu0 %342, %v116_v6   ;;  %208 = vperm.xlu1 %343, %v205_v16   ;;  %v213_v28 = vsub.s32 0, %v212_v27  ;;  %p351_p0 = scmp.ne.s32.totalorder %s305_s10, %s350_s5  ;;  %p355_p1 = scmp.lt.s32.totalorder %s305_s10, %s305_s10 }
   0xb   :  { %p356_p2 = scmp.lt.s32.totalorder %s354_s11, %s350_s5 }
   0xd   :  { %p357_p3 = por %p356_p2, %p355_p1 }
   0xf   :  { %p358_p4 = pnand %p357_p3, %p351_p0 }
  0x85   :  { %v35_v7 = vpop.permute.xlu0 %34 }
  0x89   :  { %v120_v17 = vpop.permute.xlu0 %119  ;;  %v209_v29 = vpop.permute.xlu1 %208 }
  0x8a   :  { %v214_v30 = vrot.slane %v209_v29, %v213_v28 }
  0xd9   :  { %v107_v8 = vpop.f32.mrb[0].mxu0 }
  0xda   :  { %v108_v9 = vadd.f32 %v107_v8, %v35_v7  ;;  %v327_v10 = vpop.f32.mrb[1].mxu0 }
  0xdc   :  { %v111_v11 = vmul.f32 0.5, %v108_v9 }
  0xde   :  { %344 = vtanh.f32 %v111_v11 }
  0xe8   :  { %v345_v12 = vpop.eup %344 }
  0xe9   :  { %v113_v13 = vmul.f32 0.5, %v345_v12 }
  0xeb   :  { %v114_v14 = vadd.f32 0.5, %v113_v13 }
  0xed   :  { %329 = vmatpush3.msk.msra.mxu1 %vm126_vm2, %v114_v14 }
  0xee   :  { %331 = vmatmul.mubr.msk.f32.vlgmr.msra.gmra.mrb[0].mxu1 %vm122_vm3, %v115_v15 }
 0x1c1   :  { %v196_v18 = vpop.f32.mrb[0].mxu1 }
 0x1c2   :  { %v197_v19 = vadd.f32 %v196_v18, %v120_v17  ;;  %v332_v20 = vpop.f32.mrb[1].mxu1 }
 0x1c4   :  { %v200_v21 = vmul.f32 0.5, %v197_v19 }
 0x1c6   :  { %346 = vtanh.f32 %v200_v21 }
 0x1d0   :  { %v347_v22 = vpop.eup %346 }
 0x1d1   :  { %v202_v23 = vmul.f32 0.5, %v347_v22 }
 0x1d3   :  { %v203_v24 = vadd.f32 0.5, %v202_v23 }
 0x1d5   :  { %334 = vmatpush3.msk.msra.mxu0 %vm219_vm4, %v203_v24 }
 0x1d6   :  { %336 = vmatmul.mubr.msk.f32.vlgmr.msra.gmra.mrb[2].mxu0 %vm215_vm5, %v204_v25 }
 0x2a9   :  { %v289_v31 = vpop.f32.mrb[2].mxu0 }
 0x2aa   :  { %v290_v32 = vadd.f32 %v289_v31, %v214_v30  ;;  %v337_v33 = vpop.f32.mrb[3].mxu0 }
 0x2ac   :  { %v293_v34 = vmul.f32 0.5, %v290_v32 }
 0x2ae   :  { %348 = vtanh.f32 %v293_v34 }
 0x2b8   :  { %v349_v35 = vpop.eup %348 }
 0x2b9   :  { %v295_v36 = vmul.f32 0.5, %v349_v35 }
 0x2bb   :  { %v296_v37 = vadd.f32 0.5, %v295_v36 }
 0x2bd   :  { %297 = vst [vmem:[#allocation3] sm:$0x1] %v296_v37 }
 0x2be   :  { %361 = shalt.err (!%p358_p4)
}
 0x2bf   :  { %s362_s14 = scalar_lea.hbm %s458_s7, 16 }
 0x2c0   :  { %p363_p5 = scmp.ne.s32.totalorder %s458_s7, %s362_s14  ;;  %p366_p6 = scmp.lt.u32.totalorder %s362_s14, %s458_s7 }
 0x2c2   :  { %p368_p7 = pnand %p366_p6, %p363_p5 }
 0x2c4   :  { %371 = shalt.err (!%p368_p7)
}
 0x2c5   :  { %307 = dma.vmem_to_hbm [thread:$0]  %s305_s10, 16, %s458_s7, [#allocation4]  }
 0x2c6   :  { %372 = dma.done.wait [#allocation4], 16  }
 0x2c7   :  { %373 = vsyncadd [#allocation4], 4294967280 }
 0x2c8   :  { %311 = vsyncpa [#allocation4], 1 }

</bundles_post_ra>
